<compile_context>
chip_gen: v7x
topology: tpu7x:2x2x1
jax: 0.10.0
libtpu: 0.0.40
codegen_flags: <defaults>
</compile_context>

<pallas_src>
import functools

import jax
import jax.numpy as jnp
from jax.experimental import pallas as pl
from jax.experimental.pallas import tpu as pltpu

VOCAB = 100      # synthetic GloVe vocabulary size
EMBED_DIM = 32   # GloVe embedding dim
OUT_DIM = 2      # GATFinal output_size
N_NODES = 8      # number of bags / graph nodes
N_TOKENS = 24    # total flattened token stream length


def glove_gat_kernel(tok_ids_ref,   # SMEM (T,)   int32  flat token ids
                     starts_ref,    # VMEM (N, 1) int32  bag start offsets
                     ends_ref,      # VMEM (N, 1) int32  bag end offsets
                     wv_hbm,        # HBM  (V, D) f32    GloVe table (pl.ANY)
                     wcat_ref,      # VMEM (D, F+2) bf16 [W | W@a_src | W@a_dst]
                     adj_ref,       # VMEM (N, N) f32    adjacency
                     out_ref,       # VMEM (N, F) f32    GAT output
                     tok_buf,       # VMEM scratch (T, D) f32 gathered embeddings
                     gather_sem,    # DMA sems (T,)
                     *, n_tokens, out_dim):
    # ---- 1. Kick off per-token embedding-row gather DMAs (HBM -> VMEM). ----
    @pl.loop(0, n_tokens)
    def _issue(t):
        tok = tok_ids_ref[t]
        pltpu.make_async_copy(wv_hbm.at[pl.ds(tok, 1), :],
                              tok_buf.at[pl.ds(t, 1), :],
                              gather_sem.at[t]).start()

    # ---- 2. Build the (N, T) EmbeddingBag 'mean' pooling matrix in-kernel. ----
    # (Pure VPU work on already-resident operands; overlaps the gather DMAs.)
    n = starts_ref.shape[0]
    starts = starts_ref[...]                                          # (N, 1)
    ends = ends_ref[...]                                              # (N, 1)
    tok_iota = jax.lax.broadcasted_iota(jnp.int32, (n, n_tokens), 1)  # (N, T)
    in_bag = (tok_iota >= starts) & (tok_iota < ends)
    inv_len = 1.0 / jnp.maximum((ends - starts).astype(jnp.float32), 1.0)
    seg = jnp.where(in_bag, inv_len, 0.0)                             # (N, T) f32

    # ---- 3. Wait for all gather DMAs. ----
    @pl.loop(0, n_tokens)
    def _wait(t):
        pltpu.make_async_copy(wv_hbm.at[pl.ds(0, 1), :],
                              tok_buf.at[pl.ds(t, 1), :],
                              gather_sem.at[t]).wait()

    # ---- 4. Bag-mean pooling + fused projection (one MXU op each). ----
    embedded = jnp.dot(seg, tok_buf[...],
                       preferred_element_type=jnp.float32)            # (N, D)
    hz = jnp.dot(embedded.astype(wcat_ref.dtype), wcat_ref[...],
                 preferred_element_type=jnp.float32)                  # (N, F+2)
    h = hz[:, :out_dim]                                               # (N, F)
    e_src = hz[:, out_dim:out_dim + 1]                                # (N, 1)
    e_dst = hz[:, out_dim + 1:out_dim + 2]                            # (N, 1)

    # ---- 5. Attention: LeakyReLU(0.2) logits, adjacency-masked softmax. ----
    e = e_src + jnp.transpose(e_dst)                                  # (N, N)
    e = jnp.where(e > 0, e, 0.2 * e)
    e = jnp.where(adj_ref[...] > 0.0, e, -1e9)
    e = e - jnp.max(e, axis=-1, keepdims=True)
    p = jnp.exp(e)
    alpha = p * pl.reciprocal(jnp.sum(p, axis=-1, keepdims=True), approx=True)

    # ---- 6. Aggregate neighbor features. ----
    out_ref[...] = jnp.dot(alpha, h,
                           preferred_element_type=jnp.float32).astype(out_ref.dtype)


@jax.jit
def glove_gat_forward(inputs, offsets, adj_matrix, word_vectors, W, a_vec):
    """Tiny O(N)/O(D*F) glue only; all O(N*T), O(T*D), O(N*N) work is in-kernel."""
    inputs = inputs.astype(jnp.int32)
    offsets = offsets.astype(jnp.int32)
    T = inputs.shape[0]
    N = offsets.shape[0]
    D = word_vectors.shape[1]
    F = W.shape[1]

    # Bag bounds (standard EmbeddingBag contract: sorted offsets, last bag -> T).
    ends = jnp.concatenate([offsets[1:], jnp.array([T], jnp.int32)])   # (N,)
    starts_2d = offsets.reshape(N, 1)
    ends_2d = ends.reshape(N, 1)

    # Fold the GAT projection and both attention half-vectors into one operand:
    # Wcat = [W | W@a_src | W@a_dst]  ->  single (N,D)@(D,F+2) matmul in-kernel.
    Wf = W.astype(jnp.float32)
    a_src = a_vec[:F].astype(jnp.float32).reshape(F, 1)
    a_dst = a_vec[F:].astype(jnp.float32).reshape(F, 1)
    wcat = jnp.concatenate([Wf, Wf @ a_src, Wf @ a_dst],
                           axis=1).astype(jnp.bfloat16)                # (D, F+2)

    kernel = functools.partial(glove_gat_kernel, n_tokens=T, out_dim=F)
    out = pl.pallas_call(
        kernel,
        out_shape=jax.ShapeDtypeStruct((N, F), jnp.float32),
        in_specs=[
            pl.BlockSpec(memory_space=pltpu.MemorySpace.SMEM),   # token ids
            pl.BlockSpec(memory_space=pltpu.MemorySpace.VMEM),   # bag starts
            pl.BlockSpec(memory_space=pltpu.MemorySpace.VMEM),   # bag ends
            pl.BlockSpec(memory_space=pl.ANY),                   # GloVe table in HBM
            pl.BlockSpec(memory_space=pltpu.MemorySpace.VMEM),   # Wcat (bf16)
            pl.BlockSpec(memory_space=pltpu.MemorySpace.VMEM),   # adjacency
        ],
        out_specs=pl.BlockSpec(memory_space=pltpu.MemorySpace.VMEM),
        scratch_shapes=[
            pltpu.VMEM((T, D), jnp.float32),       # gathered token embeddings
            pltpu.SemaphoreType.DMA((T,)),          # one sem per gather DMA
        ],
    )(inputs, starts_2d, ends_2d, word_vectors.astype(jnp.float32), wcat,
      adj_matrix.astype(jnp.float32))
    return out


if __name__ == "__main__":
    key = jax.random.PRNGKey(0)
    k_wv, k_w, k_a, k_tok, k_adj = jax.random.split(key, 5)

    # Deterministic synthetic "pretrained" GloVe table and GAT parameters.
    word_vectors = jax.random.normal(k_wv, (VOCAB, EMBED_DIM), jnp.float32)
    W = jax.random.normal(k_w, (EMBED_DIM, OUT_DIM), jnp.float32) * (
        (2.0 / (EMBED_DIM + OUT_DIM)) ** 0.5)
    a_vec = jax.random.normal(k_a, (2 * OUT_DIM,), jnp.float32) * 0.1

    # Example inputs: flat token stream + bag offsets + adjacency matrix.
    inputs = jax.random.randint(k_tok, (N_TOKENS,), 0, VOCAB, jnp.int32)
    offsets = jnp.array([0, 2, 5, 9, 12, 16, 19, 22], jnp.int32)      # 8 bags
    adj = (jax.random.uniform(k_adj, (N_NODES, N_NODES)) > 0.5)
    adj = (adj | adj.T).astype(jnp.float32)
    adj = jnp.maximum(adj, jnp.eye(N_NODES, dtype=jnp.float32))       # self-loops

    out = glove_gat_forward(inputs, offsets, adj, word_vectors, W, a_vec)
    jax.block_until_ready(out)
    assert out.shape == (N_NODES, OUT_DIM)
    assert bool(jnp.all(jnp.isfinite(out)))
    print("KERNEL_OK")
</pallas_src>

<mosaic_0001>
module attributes {stable_mosaic.version = 11 : i64} {
  func.func @glove_gat_kernel(%arg0: memref<24xi32, #tpu.memory_space<smem>>, %arg1: memref<8x1xi32, #tpu.memory_space<vmem>>, %arg2: memref<8x1xi32, #tpu.memory_space<vmem>>, %arg3: memref<100x32xf32, #tpu.memory_space<any>>, %arg4: memref<32x4xbf16, #tpu.memory_space<vmem>>, %arg5: memref<8x8xf32, #tpu.memory_space<vmem>>, %arg6: memref<8x2xf32, #tpu.memory_space<vmem>>, %arg7: memref<24x32xf32, #tpu.memory_space<vmem>>, %arg8: memref<24x!tpu.dma_semaphore, #tpu.memory_space<semaphore_mem>>) attributes {dimension_semantics = [], scalar_prefetch = 0 : i64, scratch_operands = 2 : i64, tpu.core_type = #tpu.core_type<tc>} {
    %c0_i32 = arith.constant 0 : i32
    %c24_i32 = arith.constant 24 : i32
    %0 = arith.addi %c0_i32, %c24_i32 : i32
    %c1_i32 = arith.constant 1 : i32
    scf.for %arg9 = %c0_i32 to %0 step %c1_i32  : i32 {
      %c1_i32_27 = arith.constant 1 : i32
      %54 = arith.muli %arg9, %c1_i32_27 : i32
      %c0_i32_28 = arith.constant 0 : i32
      %55 = arith.addi %c0_i32_28, %54 : i32
      %56 = arith.index_cast %55 : i32 to index
      %57 = memref.load %arg0[%56] : memref<24xi32, #tpu.memory_space<smem>>
      %c0_i32_29 = arith.constant 0 : i32
      %58 = tpu.memref_slice %arg3[%57, %c0_i32_29] : memref<100x32xf32, #tpu.memory_space<any>> -> memref<1x32xf32, #tpu.memory_space<any>>
      %c0_i32_30 = arith.constant 0 : i32
      %59 = tpu.memref_slice %arg7[%55, %c0_i32_30] : memref<24x32xf32, #tpu.memory_space<vmem>> -> memref<1x32xf32, #tpu.memory_space<vmem>>
      %60 = tpu.memref_slice %arg8[%55] : memref<24x!tpu.dma_semaphore, #tpu.memory_space<semaphore_mem>> -> memref<1x!tpu.dma_semaphore, #tpu.memory_space<semaphore_mem>>
      %61 = tpu.memref_squeeze %60 : memref<1x!tpu.dma_semaphore, #tpu.memory_space<semaphore_mem>> -> memref<!tpu.dma_semaphore, #tpu.memory_space<semaphore_mem>>
      tpu.enqueue_dma source(%58 : memref<1x32xf32, #tpu.memory_space<any>>) target(%59 : memref<1x32xf32, #tpu.memory_space<vmem>>) target_semaphore(%61 : memref<!tpu.dma_semaphore, #tpu.memory_space<semaphore_mem>>)
    }
    %c24_i32_0 = arith.constant 24 : i32
    %c0 = arith.constant 0 : index
    %c0_1 = arith.constant 0 : index
    %1 = vector.load %arg1[%c0, %c0_1] : memref<8x1xi32, #tpu.memory_space<vmem>>, vector<8x1xi32>
    %c0_2 = arith.constant 0 : index
    %c0_3 = arith.constant 0 : index
    %2 = vector.load %arg2[%c0_2, %c0_3] : memref<8x1xi32, #tpu.memory_space<vmem>>, vector<8x1xi32>
    %3 = tpu.iota {dimensions = array<i32: 1>} : vector<8x24xi32>
    %4 = vector.broadcast %1 : vector<8x1xi32> to vector<8x24xi32>
    %5 = arith.cmpi sge, %3, %4 : vector<8x24xi32>
    %6 = vector.broadcast %2 : vector<8x1xi32> to vector<8x24xi32>
    %7 = arith.cmpi slt, %3, %6 : vector<8x24xi32>
    %8 = arith.andi %5, %7 : vector<8x24xi1>
    %9 = arith.subi %2, %1 : vector<8x1xi32>
    %10 = arith.sitofp %9 : vector<8x1xi32> to vector<8x1xf32>
    %cst = arith.constant 1.000000e+00 : f32
    %11 = vector.broadcast %cst : f32 to vector<8x1xf32>
    %12 = arith.maximumf %10, %11 : vector<8x1xf32>
    %cst_4 = arith.constant 1.000000e+00 : f32
    %13 = vector.broadcast %cst_4 : f32 to vector<8x1xf32>
    %14 = arith.divf %13, %12 : vector<8x1xf32>
    %cst_5 = arith.constant 0.000000e+00 : f32
    %15 = vector.shape_cast %14 : vector<8x1xf32> to vector<8x1xf32>
    %16 = vector.broadcast %15 : vector<8x1xf32> to vector<8x24xf32>
    %17 = vector.broadcast %cst_5 : f32 to vector<8x24xf32>
    %18 = arith.select %8, %16, %17 : vector<8x24xi1>, vector<8x24xf32>
    %c0_i32_6 = arith.constant 0 : i32
    %c24_i32_7 = arith.constant 24 : i32
    %19 = arith.addi %c0_i32_6, %c24_i32_7 : i32
    %c1_i32_8 = arith.constant 1 : i32
    scf.for %arg9 = %c0_i32_6 to %19 step %c1_i32_8  : i32 {
      %c1_i32_27 = arith.constant 1 : i32
      %54 = arith.muli %arg9, %c1_i32_27 : i32
      %c0_i32_28 = arith.constant 0 : i32
      %55 = arith.addi %c0_i32_28, %54 : i32
      %c0_i32_29 = arith.constant 0 : i32
      %c0_i32_30 = arith.constant 0 : i32
      %56 = tpu.memref_slice %arg3[%c0_i32_29, %c0_i32_30] : memref<100x32xf32, #tpu.memory_space<any>> -> memref<1x32xf32, #tpu.memory_space<any>>
      %c0_i32_31 = arith.constant 0 : i32
      %57 = tpu.memref_slice %arg7[%55, %c0_i32_31] : memref<24x32xf32, #tpu.memory_space<vmem>> -> memref<1x32xf32, #tpu.memory_space<vmem>>
      %58 = tpu.memref_slice %arg8[%55] : memref<24x!tpu.dma_semaphore, #tpu.memory_space<semaphore_mem>> -> memref<1x!tpu.dma_semaphore, #tpu.memory_space<semaphore_mem>>
      %59 = tpu.memref_squeeze %58 : memref<1x!tpu.dma_semaphore, #tpu.memory_space<semaphore_mem>> -> memref<!tpu.dma_semaphore, #tpu.memory_space<semaphore_mem>>
      tpu.wait_dma2 semaphore(%59 : memref<!tpu.dma_semaphore, #tpu.memory_space<semaphore_mem>>) src(%56 : memref<1x32xf32, #tpu.memory_space<any>>) dst(%57 : memref<1x32xf32, #tpu.memory_space<vmem>>)
    }
    %c24_i32_9 = arith.constant 24 : i32
    %c0_10 = arith.constant 0 : index
    %c0_11 = arith.constant 0 : index
    %20 = vector.load %arg7[%c0_10, %c0_11] : memref<24x32xf32, #tpu.memory_space<vmem>>, vector<24x32xf32>
    %cst_12 = arith.constant dense<0.000000e+00> : vector<8x32xf32>
    %21 = tpu.matmul %18, %20, %cst_12 {dimension_numbers = #tpu.dot_dimension_numbers<[1], [0], [0], [1], [0, 0, 1, 1], [], []>} : vector<8x24xf32>, vector<24x32xf32>, vector<8x32xf32> -> vector<8x32xf32>
    %22 = arith.truncf %21 : vector<8x32xf32> to vector<8x32xbf16>
    %c0_13 = arith.constant 0 : index
    %c0_14 = arith.constant 0 : index
    %23 = vector.load %arg4[%c0_13, %c0_14] : memref<32x4xbf16, #tpu.memory_space<vmem>>, vector<32x4xbf16>
    %cst_15 = arith.constant dense<0.000000e+00> : vector<8x4xf32>
    %24 = tpu.matmul %22, %23, %cst_15 {dimension_numbers = #tpu.dot_dimension_numbers<[1], [0], [0], [1], [0, 0, 1, 1], [], []>} : vector<8x32xbf16>, vector<32x4xbf16>, vector<8x4xf32> -> vector<8x4xf32>
    %25 = vector.extract_strided_slice %24 {offsets = [0, 0], sizes = [8, 2], strides = [1, 1]} : vector<8x4xf32> to vector<8x2xf32>
    %26 = vector.extract_strided_slice %24 {offsets = [0, 2], sizes = [8, 1], strides = [1, 1]} : vector<8x4xf32> to vector<8x1xf32>
    %27 = vector.extract_strided_slice %24 {offsets = [0, 3], sizes = [8, 1], strides = [1, 1]} : vector<8x4xf32> to vector<8x1xf32>
    %28 = tpu.transpose %27, [1, 0] : vector<8x1xf32> -> vector<1x8xf32>
    %29 = vector.broadcast %26 : vector<8x1xf32> to vector<8x8xf32>
    %30 = vector.broadcast %28 : vector<1x8xf32> to vector<8x8xf32>
    %31 = arith.addf %29, %30 : vector<8x8xf32>
    %cst_16 = arith.constant 0.000000e+00 : f32
    %32 = vector.broadcast %cst_16 : f32 to vector<8x8xf32>
    %33 = arith.cmpf ogt, %31, %32 : vector<8x8xf32>
    %cst_17 = arith.constant 2.000000e-01 : f32
    %34 = vector.broadcast %cst_17 : f32 to vector<8x8xf32>
    %35 = arith.mulf %34, %31 : vector<8x8xf32>
    %36 = arith.select %33, %31, %35 : vector<8x8xi1>, vector<8x8xf32>
    %c0_18 = arith.constant 0 : index
    %c0_19 = arith.constant 0 : index
    %37 = vector.load %arg5[%c0_18, %c0_19] : memref<8x8xf32, #tpu.memory_space<vmem>>, vector<8x8xf32>
    %cst_20 = arith.constant 0.000000e+00 : f32
    %38 = vector.broadcast %cst_20 : f32 to vector<8x8xf32>
    %39 = arith.cmpf ogt, %37, %38 : vector<8x8xf32>
    %cst_21 = arith.constant -1.000000e+09 : f32
    %40 = vector.broadcast %cst_21 : f32 to vector<8x8xf32>
    %41 = arith.select %39, %36, %40 : vector<8x8xi1>, vector<8x8xf32>
    %cst_22 = arith.constant dense<0xFF800000> : vector<8xf32>
    %42 = vector.multi_reduction <maximumf>, %41, %cst_22 [1] : vector<8x8xf32> to vector<8xf32>
    %43 = vector.shape_cast %42 : vector<8xf32> to vector<8x1xf32>
    %44 = vector.broadcast %43 : vector<8x1xf32> to vector<8x8xf32>
    %45 = arith.subf %41, %44 : vector<8x8xf32>
    %46 = math.exp %45 : vector<8x8xf32>
    %cst_23 = arith.constant dense<0.000000e+00> : vector<8xf32>
    %47 = vector.multi_reduction <add>, %46, %cst_23 [1] : vector<8x8xf32> to vector<8xf32>
    %48 = vector.shape_cast %47 : vector<8xf32> to vector<8x1xf32>
    %49 = tpu.reciprocal %48 {approx = true} : vector<8x1xf32> -> vector<8x1xf32>
    %50 = vector.broadcast %49 : vector<8x1xf32> to vector<8x8xf32>
    %51 = arith.mulf %46, %50 : vector<8x8xf32>
    %cst_24 = arith.constant dense<0.000000e+00> : vector<8x2xf32>
    %52 = tpu.matmul %51, %25, %cst_24 {dimension_numbers = #tpu.dot_dimension_numbers<[1], [0], [0], [1], [0, 0, 1, 1], [], []>} : vector<8x8xf32>, vector<8x2xf32>, vector<8x2xf32> -> vector<8x2xf32>
    %c0_25 = arith.constant 0 : index
    %c0_26 = arith.constant 0 : index
    %53 = vector.load %arg6[%c0_25, %c0_26] : memref<8x2xf32, #tpu.memory_space<vmem>>, vector<8x2xf32>
    tpu.vector_store %arg6[%c0_25, %c0_26], %52 {strides = array<i32>} : memref<8x2xf32, #tpu.memory_space<vmem>>, vector<8x2xf32>,
    return
  }
}

</mosaic_0001>

<bundles_post_ra>
// kernel: glove_gat_forward.1
= control target key start
LH: loop header
LB: loop body
LE: loop exit
PB: predicated region body
PF: predicated region fallthrough
CT: control target
= control target key end

     0   :  { %11 = vsyncpa [#allocation5], 0  ;;  %s799_s0 = inlined_call_operand.vmem [shape: s32[24], index: 0, kind: input, shape index: {}]   ;;  %s800_s1 = inlined_call_operand.vmem [shape: s32[8,1], index: 1, kind: input, shape index: {}]   ;;  %s801_s2 = inlined_call_operand.vmem [shape: s32[8,1], index: 2, kind: input, shape index: {}]   ;;  %s802_s3 = inlined_call_operand.vmem [shape: f32[100,32], index: 3, kind: input, shape index: {}]   ;;  %s803_s4 = inlined_call_operand.vmem [shape: bf16[32,4], index: 4, kind: input, shape index: {}]   ;;  %s804_s5 = inlined_call_operand.vmem [shape: f32[8,8], index: 5, kind: input, shape index: {}]   ;;  %s805_s6 = inlined_call_operand.vmem [shape: f32[8,2], index: 6, kind: output, shape index: {}]  }
   0x1   :  { %s18_s23 = sshll.u32 %s799_s0, 4  ;;  %s19_s23 = int_to_ptr.vmem [resolvable:$true] %s18_s23 }
   0x2   :  { %s692_s24 = scalar_lea.vmem %s19_s23, 16  ;;  %p697_p1 = scmp.lt.s32.totalorder %s19_s23, %s19_s23 }
   0x3   :  { %p693_p0 = scmp.ne.s32.totalorder %s19_s23, %s692_s24  ;;  %p698_p2 = scmp.lt.s32.totalorder %s692_s24, %s692_s24 }
   0x5   :  { %p699_p3 = por %p698_p2, %p697_p1 }
   0x7   :  { %p700_p4 = pnand %p699_p3, %p693_p0 }
   0x9   :  { %703 = shalt.err (!%p700_p4)
}
   0xa   :  { %s724_s25 = smov [#allocation4]  }
   0xb   :  { %21 = dma.vmem_to_smem %s19_s23, 16, %s724_s25, [#allocation5]  }
   0xc   :  { %712 = dma.done.wait [#allocation5], 16  }
   0xd   :  { %713 = vsyncadd [#allocation5], 4294967280 }
   0xe   :  { %33 = sfence }
   0xf   :  { %s716_s26 = smov 0  }
  0x10 LB: > { %s41_s27 = sld [smem:[#allocation4 + %s718_s26]]  ;;  %s43_s30 = scalar_lea.vmem [#allocation2], %s718_s26  ;;  %s718_s26 = sphi %s716_s26, %s40_s26  }
  0x11   : > { %s44_s7 = scalar_lea.sflag [#allocation3], %s718_s26 }
  0x16   : > { %s42_s29 = scalar_lea.vmem %s802_s3, %s41_s27 }
  0x17   : > { %v62_v0 = vld [vmem:[%s42_s29] sm:$0x1] }
  0x18   : > { %63 = vst [vmem:[%s43_s30] sm:$0x1] %v62_v0 }
  0x19   : > { %88 = vsyncadd %s44_s7, 16  ;;  %s40_s26 = sadd.s32 1, %s718_s26  }
  0x1a   : > { %p37_p5 = scmp.ge.s32.totalorder %s40_s26, 24  }
  0x1b   :  { %v89_v1 = vld [vmem:[%s800_s1] sm:$0xff] (%p37_p5)  ;;  %v725_v3 = vmov (%p37_p5), 0   ;;  %v91_v9 = vlaneseq (%p37_p5)  ;;  %s720_s1 = smov (%p37_p5), 0  }
  0x1c   :  { %39 = sbr.rel (!%p37_p5) target bundleno = 16 (0x10), region = 125  ;;  %v90_v2 = vld [vmem:[%s801_s2] sm:$0xff] (%p37_p5)  ;;  %681 = vset.pattern.permute.xlu0 (%p37_p5), %v725_v3  ;;  %682 = vset.pattern.permute.xlu1 (%p37_p5), %v725_v3 }
  0x1d   :  { %v102_v4 = vsub.s32 (%p37_p5), %v90_v2, %v89_v1  ;;  %94 = vperm.xlu0 (%p37_p5), %681, %v89_v1   ;;  %v92_v10 = vand.u32 (%p37_p5), 127, %v91_v9 }
  0x1f   :  { %v103_v5 = vcvt.s32.f32 (%p37_p5), %v102_v4 }
  0x21   :  { %v104_v6 = vmax.f32 (%p37_p5), %v103_v5, 1.0  ;;  %98 = vperm.xlu0 (%p37_p5), %681, %v90_v2  }
  0x23   :  { %683 = vrcp.f32 %v104_v6 }
  0x2d   :  { %v684_v7 = vpop.eup %683 }
  0x2e   :  { %109 = vperm.xlu1 %682, %v684_v7  }
  0x9c   :  { %v95_v8 = vpop.permute.xlu0 %94 }
  0x9d   :  { %vm96_vm0 = vcmp.ge.s32.totalorder %v92_v10, %v95_v8 }
  0xa0   :  { %v99_v11 = vpop.permute.xlu0 %98 }
  0xa1   :  { %vm100_vm1 = vcmp.lt.s32.totalorder %v92_v10, %v99_v11 }
  0xa2   :  { %vm778_vm2 = vmand %vm96_vm0, %vm100_vm1 }
  0xad   :  { %v110_v13 = vpop.permute.xlu1 %109 }
  0xae   :  { %v112_v14 = vsel %vm778_vm2, %v110_v13, 0.0 }
  0xaf LB: > { %s119_s2 = scalar_lea.sflag [#allocation3], %s722_s1  ;;  %s722_s1 = sphi %s720_s1, %s118_s1  }
  0xb0   : > { %714 = dma.done.wait %s119_s2, 16 }
  0xb1   : > { %715 = vsyncadd %s119_s2, 4294967280  ;;  %s118_s1 = sadd.s32 1, %s722_s1  }
  0xb2   : > { %p115_p6 = scmp.ge.s32.totalorder %s118_s1, 24  }
  0xb3   :  { %v123_v15 = vld [vmem:[#allocation2] sm:$0xff] (%p115_p6)  ;;  %v124_v16 = vld [vmem:[#allocation2 + $0x8] sm:$0xff] (%p115_p6)  ;;  %v726_v17 = vmov (%p115_p6), 0.0|0.0   ;;  %vm727_vm3 = vmmov (%p115_p6), 0   ;;  %v728_v19 = vmov (%p115_p6), 0.0   ;;  %v125_v21 = vld [vmem:[#allocation2 + $0x10] sm:$0xff] (%p115_p6) }
  0xb4   :  { %117 = sbr.rel (!%p115_p6) target bundleno = 175 (0xaf), region = 136  ;;  %655 = vmatprep.subr.bf16.mxu0 (%p115_p6), %v726_v17  ;;  %v656_v18 = vpack.c.bf16 (%p115_p6), %v124_v16, %v123_v15  ;;  %639 = vmatprep.mubr.msk.f32.mxu0 (%p115_p6), %vm727_vm3, %v728_v19  ;;  %v686_v20 = vld [vmem:[%s803_s4] sm:$0xff] (%p115_p6)   ;;  %vm126_vm4 = vcmask (%p115_p6), 195584   ;;  %v687_v22 = vld [vmem:[%s803_s4 + $0x8] sm:$0xff] (%p115_p6)   ;;  %vm217_vm5 = vcmask (%p115_p6), 261120   ;;  %v729_v26 = vmov (%p115_p6), 2  }
  0xb5   :  { %642 = vmatprep.subr.bf16.mxu1 (%p115_p6), %v728_v19  ;;  %646 = vmatprep.mubr.msk.bf16.mxu1 (%p115_p6), %vm727_vm3, %v728_v19  ;;  %s730_s15 = smov (%p115_p6), 125   ;;  %v302_v32 = vshrl.u32 (%p115_p6), %v91_v9, 7  ;;  %v309_v37 = vld [vmem:[%s804_s5] sm:$0xff] (%p115_p6)  ;;  %vm312_vm8 = vcmask (%p115_p6), 64512   ;;  %vm397_vm9 = vcmask (%p115_p6), 15360  }
  0xb6   :  { %657 = vmatpush3.bf16.msra.mxu0 (%p115_p6), %v656_v18  ;;  %643 = vmatpush3.bf16.msra.mxu1 (%p115_p6), %v686_v20  ;;  %vm310_vm7 = vcmp.gt.f32.partialorder (%p115_p6), %v309_v37, 0.0 }
  0xb7   :  { %637 = vmatprep.subr.mxu0 (%p115_p6), %v728_v19  ;;  %644 = vmatprep.subr.bf16.mxu1 (%p115_p6), %v728_v19  ;;  %v303_v33 = vsub.s32 (%p115_p6), 0, %v302_v32 }
  0xb8   :  { %685 = vset.pattern.permute.xlu0 (%p115_p6), %v729_v26 }
  0xba   :  { %638 = vmatpush3.msra.mxu0 (%p115_p6), %v125_v21  ;;  %645 = vmatpush3.bf16.msra.mxu1 (%p115_p6), %v687_v22 }
  0xbb   :  { %640 = vmatmul.mubr.msk.f32.vlgmr.msra.gmra.mrb[0].mxu0 %vm126_vm4, %v112_v14  ;;  %650 = vmatprep.subr.mxu0 %v728_v19 }
  0xbc   :  { %652 = vmatprep.mubr.msk.f32.mxu0 %vm727_vm3, %v728_v19 }
 0x18e   :  { %v196_v23 = vpop.f32.mrb[0].mxu0 }
 0x18f   :  { %v200_v24 = vpack.c.bf16 %v196_v23, %v196_v23  ;;  %v641_v25 = vpop.f32.mrb[1].mxu0 }
 0x191   :  { %647 = vmatmul.mubr.msk.bf16.vlgmr.msra.gmra.mrb[0].mxu1 %vm217_vm5, %v200_v24 }
 0x264   :  { %v255_v27 = vpop.f32.mrb[0].mxu1 }
 0x265   :  { %262 = vrot.lane.b32.xlu0 %v255_v27, %s730_s15  ;;  %v648_v28 = vpop.f32.mrb[1].mxu1  ;;  %651 = vmatpush3.msra.mxu0 %v255_v27 }
 0x266   :  { %v258_v29 = vpop.f32.mrb[2].mxu1 }
 0x267   :  { %v649_v30 = vpop.f32.mrb[3].mxu1 }
 0x269   :  { %298 = vperm.xlu0 %685, %v255_v27  }
 0x2d7   :  { %v263_v31 = vpop.permute.xlu0 %262 }
 0x2d8   :  { %265 = vxpose.xlu1.b32.start.end [1/1] (short) (narrow) %v263_v31, 8 }
 0x2e8   :  { %v299_v36 = vpop.permute.xlu0 %298 }
 0x358   :  { %v281_v34 = vpop.trf.xlu1 }
 0x359   :  { %v304_v35 = vrot.slane %v281_v34, %v303_v33 }
 0x35b   :  { %v305_v38 = vadd.f32 %v304_v35, %v299_v36 }
 0x35d   :  { %vm306_vm6 = vcmp.gt.f32.partialorder %v305_v38, 0.0  ;;  %v307_v39 = vmul.f32 0.2, %v305_v38 }
 0x35f   :  { %v308_v40 = vsel %vm306_vm6, %v305_v38, %v307_v39 }
 0x360   :  { %v311_v41 = vsel %vm310_vm7, %v308_v40, -1e+09 }
 0x361   :  { %v313_v42 = vsel %vm312_vm8, %v311_v41, -inf }
 0x362   :  { %314 = vmax.xlane.f32.xlu1 %v313_v42 }
 0x3ef   :  { %v315_v43 = vpop.xlane.xlu1 %314 }
 0x3f0   :  { %v316_v44 = vsub.f32 %v311_v41, %v315_v43 }
 0x3f2   :  { %v317_v45 = vmul.f32 1.442695, %v316_v44 }
 0x3f4   :  { %688 = vpow2.f32 %v317_v45 }
 0x3fe   :  { %v689_v46 = vpop.eup %688 }
 0x3ff   :  { %v319_v47 = vsel %vm312_vm8, %v689_v46, 0.0 }
 0x400   :  { %320 = vadd.xlane.f32.xlu0 %v319_v47 }
 0x48d   :  { %v321_v48 = vpop.xlane.xlu0 %320 }
 0x48e   :  { %690 = vrcp.f32 %v321_v48 }
 0x498   :  { %v691_v49 = vpop.eup %690 }
 0x499   :  { %v323_v50 = vmul.f32 %v691_v49, %v689_v46 }
 0x49b   :  { %653 = vmatmul.mubr.msk.f32.vlgmr.msra.gmra.mrb[2].mxu0 %vm312_vm8, %v323_v50 }
 0x56e   :  { %v393_v51 = vpop.f32.mrb[2].mxu0 }
 0x56f   :  { %398 = vst.msk [vmem:[%s805_s6] sm:$0xff] %vm397_vm9, %v393_v51  ;;  %v654_v52 = vpop.f32.mrb[3].mxu0 }
 0x570   :  { %403 = vsyncpa [#allocation5], 1 }
 0x571   :  { %404 = vsyncmov [#allocation3] }
 0x574   :  { %s405_s18 = vpop.sfrf %404 }
 0x575   :  { %p600_p7 = scmp.ne.s32.totalorder %s405_s18, 0 }
 0x577   :  { %409 = shalt.err (%p600_p7)  }
 0x578   :  { %411 = vsyncmov [#allocation3 + $0x1] }
 0x57b   :  { %s412_s19 = vpop.sfrf %411 }
 0x57c   :  { %p601_p8 = scmp.ne.s32.totalorder %s412_s19, 0 }
 0x57e   :  { %416 = shalt.err (%p601_p8)  }
 0x57f   :  { %418 = vsyncmov [#allocation3 + $0x2] }
 0x582   :  { %s419_s20 = vpop.sfrf %418 }
 0x583   :  { %p602_p9 = scmp.ne.s32.totalorder %s419_s20, 0 }
 0x585   :  { %423 = shalt.err (%p602_p9)  }
 0x586   :  { %425 = vsyncmov [#allocation3 + $0x3] }
 0x589   :  { %s426_s21 = vpop.sfrf %425 }
 0x58a   :  { %p603_p10 = scmp.ne.s32.totalorder %s426_s21, 0 }
 0x58c   :  { %430 = shalt.err (%p603_p10)  }
 0x58d   :  { %432 = vsyncmov [#allocation3 + $0x4] }
 0x590   :  { %s433_s6 = vpop.sfrf %432 }
 0x591   :  { %p604_p11 = scmp.ne.s32.totalorder %s433_s6, 0 }
 0x593   :  { %437 = shalt.err (%p604_p11)  }
 0x594   :  { %439 = vsyncmov [#allocation3 + $0x5] }
 0x597   :  { %s440_s22 = vpop.sfrf %439 }
 0x598   :  { %p605_p12 = scmp.ne.s32.totalorder %s440_s22, 0 }
 0x59a   :  { %444 = shalt.err (%p605_p12)  }
 0x59b   :  { %446 = vsyncmov [#allocation3 + $0x6] }
 0x59e   :  { %s447_s23 = vpop.sfrf %446 }
 0x59f   :  { %p606_p13 = scmp.ne.s32.totalorder %s447_s23, 0 }
 0x5a1   :  { %451 = shalt.err (%p606_p13)  }
 0x5a2   :  { %453 = vsyncmov [#allocation3 + $0x7] }
 0x5a5   :  { %s454_s24 = vpop.sfrf %453 }
 0x5a6   :  { %p607_p0 = scmp.ne.s32.totalorder %s454_s24, 0 }
 0x5a8   :  { %458 = shalt.err (%p607_p0)  }
 0x5a9   :  { %460 = vsyncmov [#allocation3 + $0x8] }
 0x5ac   :  { %s461_s25 = vpop.sfrf %460 }
 0x5ad   :  { %p608_p1 = scmp.ne.s32.totalorder %s461_s25, 0 }
 0x5af   :  { %465 = shalt.err (%p608_p1)  }
 0x5b0   :  { %467 = vsyncmov [#allocation3 + $0x9] }
 0x5b3   :  { %s468_s26 = vpop.sfrf %467 }
 0x5b4   :  { %p609_p2 = scmp.ne.s32.totalorder %s468_s26, 0 }
 0x5b6   :  { %472 = shalt.err (%p609_p2)  }
 0x5b7   :  { %474 = vsyncmov [#allocation3 + $0xa] }
 0x5ba   :  { %s475_s27 = vpop.sfrf %474 }
 0x5bb   :  { %p610_p3 = scmp.ne.s32.totalorder %s475_s27, 0 }
 0x5bd   :  { %479 = shalt.err (%p610_p3)  }
 0x5be   :  { %481 = vsyncmov [#allocation3 + $0xb] }
 0x5c1   :  { %s482_s28 = vpop.sfrf %481 }
 0x5c2   :  { %p611_p4 = scmp.ne.s32.totalorder %s482_s28, 0 }
 0x5c4   :  { %486 = shalt.err (%p611_p4)  }
 0x5c5   :  { %488 = vsyncmov [#allocation3 + $0xc] }
 0x5c8   :  { %s489_s0 = vpop.sfrf %488 }
 0x5c9   :  { %p612_p5 = scmp.ne.s32.totalorder %s489_s0, 0 }
 0x5cb   :  { %493 = shalt.err (%p612_p5)  }
 0x5cc   :  { %495 = vsyncmov [#allocation3 + $0xd] }
 0x5cf   :  { %s496_s29 = vpop.sfrf %495 }
 0x5d0   :  { %p613_p6 = scmp.ne.s32.totalorder %s496_s29, 0 }
 0x5d2   :  { %500 = shalt.err (%p613_p6)  }
 0x5d3   :  { %502 = vsyncmov [#allocation3 + $0xe] }
 0x5d6   :  { %s503_s30 = vpop.sfrf %502 }
 0x5d7   :  { %p614_p7 = scmp.ne.s32.totalorder %s503_s30, 0 }
 0x5d9   :  { %507 = shalt.err (%p614_p7)  }
 0x5da   :  { %509 = vsyncmov [#allocation3 + $0xf] }
 0x5dd   :  { %s510_s7 = vpop.sfrf %509 }
 0x5de   :  { %p615_p8 = scmp.ne.s32.totalorder %s510_s7, 0 }
 0x5e0   :  { %514 = shalt.err (%p615_p8)  }
 0x5e1   :  { %516 = vsyncmov [#allocation3 + $0x10] }
 0x5e4   :  { %s517_s8 = vpop.sfrf %516 }
 0x5e5   :  { %p616_p9 = scmp.ne.s32.totalorder %s517_s8, 0 }
 0x5e7   :  { %521 = shalt.err (%p616_p9)  }
 0x5e8   :  { %523 = vsyncmov [#allocation3 + $0x11] }
 0x5eb   :  { %s524_s9 = vpop.sfrf %523 }
 0x5ec   :  { %p617_p10 = scmp.ne.s32.totalorder %s524_s9, 0 }
 0x5ee   :  { %528 = shalt.err (%p617_p10)  }
 0x5ef   :  { %530 = vsyncmov [#allocation3 + $0x12] }
 0x5f2   :  { %s531_s10 = vpop.sfrf %530 }
 0x5f3   :  { %p618_p11 = scmp.ne.s32.totalorder %s531_s10, 0 }
 0x5f5   :  { %535 = shalt.err (%p618_p11)  }
 0x5f6   :  { %537 = vsyncmov [#allocation3 + $0x13] }
 0x5f9   :  { %s538_s11 = vpop.sfrf %537 }
 0x5fa   :  { %p619_p12 = scmp.ne.s32.totalorder %s538_s11, 0 }
 0x5fc   :  { %542 = shalt.err (%p619_p12)  }
 0x5fd   :  { %544 = vsyncmov [#allocation3 + $0x14] }
 0x600   :  { %s545_s1 = vpop.sfrf %544 }
 0x601   :  { %p620_p13 = scmp.ne.s32.totalorder %s545_s1, 0 }
 0x603   :  { %549 = shalt.err (%p620_p13)  }
 0x604   :  { %551 = vsyncmov [#allocation3 + $0x15] }
 0x607   :  { %s552_s2 = vpop.sfrf %551 }
 0x608   :  { %p621_p0 = scmp.ne.s32.totalorder %s552_s2, 0 }
 0x60a   :  { %556 = shalt.err (%p621_p0)  }
 0x60b   :  { %558 = vsyncmov [#allocation3 + $0x16] }
 0x60e   :  { %s559_s3 = vpop.sfrf %558 }
 0x60f   :  { %p622_p1 = scmp.ne.s32.totalorder %s559_s3, 0 }
 0x611   :  { %563 = shalt.err (%p622_p1)  }
 0x612   :  { %565 = vsyncmov [#allocation3 + $0x17] }
 0x615   :  { %s566_s12 = vpop.sfrf %565 }
 0x616   :  { %p623_p2 = scmp.ne.s32.totalorder %s566_s12, 0 }
 0x618   :  { %570 = shalt.err (%p623_p2)  }

</bundles_post_ra>
